<compile_context>
chip_gen: v7x
topology: tpu7x:2x2x1
jax: 0.10.0
libtpu: 0.0.40
codegen_flags: <defaults>
</compile_context>

<pallas_src>
import jax
import jax.numpy as jnp
from jax.experimental import pallas as pl
from jax.experimental.pallas import tpu as pltpu

_SUBLANE = 8
_LANE = 128


def _round_up(x, m):
    return ((x + m - 1) // m) * m


def _vmem_budget_bytes():
    """Generation-aware scoped-VMEM target: capacity minus ~16 MiB headroom
    (=> ~112 MiB on v5e/v6e, ~48 MiB on v7x)."""
    cap = 64 * 1024 * 1024  # conservative fallback (v7x per-core VMEM)
    try:
        info = pltpu.get_tpu_info()
        cap = int(getattr(info, "vmem_capacity_bytes", cap))
    except Exception:
        pass
    return max(cap - 16 * 1024 * 1024, 32 * 1024 * 1024)


def _choose_tiles(B, Dp, H, in_bytes, w_bytes, budget):
    """Pick (batch tile, hidden chunk, padded hidden) for the given budget."""

    def per_row(th):
        # VMEM bytes per batch row:
        #   streamed (row, Dp) blocks: z_f in + 3 outputs, double-buffered
        #   f32 intermediates: logits accumulator + mask/z32/zdf (+ slack)
        #   hidden activation h: f32 out of the MXU + cast copy in W2 dtype
        stream = (1 + 3) * 2 * Dp * in_bytes
        f32_tmp = 5 * Dp * 4
        hidden = th * (4 + w_bytes)
        return stream + f32_tmp + hidden

    # Path 1: full weights resident (loaded once, single VMEM buffer).
    full_w = (2 * Dp * H + Dp + H) * w_bytes
    if full_w + _SUBLANE * per_row(H) <= budget:
        th, Hp = H, H
        avail = budget - full_w
    else:
        # Path 2: stream W1/W2 in hidden-dim chunks (double-buffered) and
        # accumulate the second matmul in an f32 scratch.
        th = 512 if H >= 512 else _round_up(min(H, 256), _LANE)
        while th > _LANE and (2 * (2 * Dp * th + th) * w_bytes
                              + _SUBLANE * per_row(th)) > budget:
            th //= 2
        # TODO(synk): if even a 128-wide hidden chunk with an 8-row batch tile
        # cannot fit (enormous D), the output dim D would need tiling too.
        Hp = _round_up(H, th)
        avail = budget - 2 * (2 * Dp * th + th) * w_bytes - 2 * Dp * w_bytes

    tb = max(_SUBLANE, avail // per_row(th))
    # Keep >= ~4 grid steps over the batch so prefetch/writeback overlap
    # compute; cap at 2048 rows (per-step overhead negligible past this).
    tb = min(tb, 2048, max(_SUBLANE, _round_up(pl.cdiv(B, 4), _SUBLANE)))
    if tb >= 256:
        tb = (tb // 256) * 256            # fill the MXU M dimension
    else:
        tb = max(_SUBLANE, (tb // _SUBLANE) * _SUBLANE)
    return int(tb), int(th), int(Hp)


def _maybe_single_buffered(shape, index_map, single_buffer):
    """BlockSpec; when the block never changes across the grid, request a
    single VMEM buffer instead of the default double buffer."""
    if single_buffer and hasattr(pl, "Buffered"):
        try:
            return pl.BlockSpec(shape, index_map, pipeline_mode=pl.Buffered(1))
        except TypeError:
            pass
    return pl.BlockSpec(shape, index_map)


def _decomposer_kernel(z_ref, w1_ref, b1_ref, w2_ref, b2_ref,
                       zdf_ref, zos_ref, mask_ref, acc_ref):
    j = pl.program_id(1)

    @pl.when(j == 0)
    def _init():
        acc_ref[...] = jnp.zeros_like(acc_ref)

    z = z_ref[...]                                              # (TB, Dp)

    # First linear + ReLU on this hidden chunk (MXU, f32 accumulation).
    h = jnp.dot(z, w1_ref[...], preferred_element_type=jnp.float32)
    h = jnp.maximum(h + b1_ref[...].astype(jnp.float32), 0.0)
    h = h.astype(w2_ref.dtype)                                  # (TB, TH)

    # Second linear: accumulate this chunk's logits contribution.
    acc_ref[...] += jnp.dot(h, w2_ref[...], preferred_element_type=jnp.float32)

    @pl.when(j == pl.num_programs(1) - 1)
    def _finalize():
        logits = acc_ref[...] + b2_ref[...].astype(jnp.float32)
        mask = jax.nn.sigmoid(logits)                           # (TB, Dp) f32
        mask_ref[...] = mask.astype(mask_ref.dtype)             # store early
        z32 = z.astype(jnp.float32)
        zdf = mask * z32
        zdf_ref[...] = zdf.astype(zdf_ref.dtype)
        zos_ref[...] = (z32 - zdf).astype(zos_ref.dtype)        # exact complement in f32


def decomposer_forward(z_f, w1, b1, w2, b2, *, block_b=None, block_h=None):
    """z_f: (B, D). Returns (z_df, z_os, mask), all (B, D)."""
    B, D = z_f.shape
    Din, H = w1.shape
    assert Din == D and w2.shape == (H, D) and b1.shape == (H,) and b2.shape == (D,)

    in_bytes = jnp.dtype(z_f.dtype).itemsize
    w_bytes = jnp.dtype(w1.dtype).itemsize
    budget = _vmem_budget_bytes()

    Dp = _round_up(D, _LANE)                      # lane-dense output stores
    tb, th, Hp = _choose_tiles(B, Dp, H, in_bytes, w_bytes, budget)
    if block_b is not None:
        tb = int(block_b)
    if block_h is not None:
        th = int(block_h)
        Hp = _round_up(H, th)

    # Wrapper-side zero padding of D / H: padded rows/cols contribute nothing
    # (zeros through both matmuls) and the outputs are sliced back below.
    zp = z_f if Dp == D else jnp.pad(z_f, ((0, 0), (0, Dp - D)))
    w1p = w1 if (Dp == D and Hp == H) else jnp.pad(w1, ((0, Dp - D), (0, Hp - H)))
    b1p = b1 if Hp == H else jnp.pad(b1, (0, Hp - H))
    w2p = w2 if (Dp == D and Hp == H) else jnp.pad(w2, ((0, Hp - H), (0, Dp - D)))
    b2p = b2 if Dp == D else jnp.pad(b2, (0, Dp - D))
    b1_2d = b1p.reshape(1, Hp)
    b2_2d = b2p.reshape(1, Dp)

    grid = (pl.cdiv(B, tb), Hp // th)
    resident_weights = grid[1] == 1   # full weights fit -> single-buffer them

    batched = pl.BlockSpec((tb, Dp), lambda i, j: (i, 0))
    out_shapes = (
        jax.ShapeDtypeStruct((B, Dp), z_f.dtype),   # z_df
        jax.ShapeDtypeStruct((B, Dp), z_f.dtype),   # z_os
        jax.ShapeDtypeStruct((B, Dp), z_f.dtype),   # mask
    )
    cost = pl.CostEstimate(
        flops=4 * B * Dp * Hp,
        transcendentals=B * Dp,
        bytes_accessed=4 * B * Dp * in_bytes + (2 * Dp * Hp + Dp + Hp) * w_bytes,
    )

    def build(single_buffer):
        in_specs = [
            batched,                                                        # z_f
            _maybe_single_buffered((Dp, th), lambda i, j: (0, j),
                                   single_buffer and resident_weights),     # W1
            _maybe_single_buffered((1, th), lambda i, j: (0, j),
                                   single_buffer and resident_weights),     # b1
            _maybe_single_buffered((th, Dp), lambda i, j: (j, 0),
                                   single_buffer and resident_weights),     # W2
            _maybe_single_buffered((1, Dp), lambda i, j: (0, 0),
                                   single_buffer),                          # b2
        ]
        grid_spec = pltpu.PrefetchScalarGridSpec(
            num_scalar_prefetch=0,
            grid=grid,
            in_specs=in_specs,
            out_specs=(batched, batched, batched),
            scratch_shapes=[pltpu.VMEM((tb, Dp), jnp.float32)],   # logits acc
        )
        return pl.pallas_call(
            _decomposer_kernel,
            out_shape=out_shapes,
            grid_spec=grid_spec,
            cost_estimate=cost,
            compiler_params=pltpu.CompilerParams(
                # TODO(synk): on v7x, pltpu.CORE_PARALLEL on the batch axis
                # would split it across both TensorCores; kept "parallel" here
                # since CORE_PARALLEL cannot be safely emitted for all chips.
                dimension_semantics=("parallel", "arbitrary"),
                vmem_limit_bytes=int(budget),
            ),
        )

    args = (zp, w1p, b1_2d, w2p, b2_2d)
    try:
        z_df, z_os, mask = build(single_buffer=True)(*args)
    except Exception:
        # Fallback if pl.Buffered(1) is not accepted by this JAX/Mosaic build.
        z_df, z_os, mask = build(single_buffer=False)(*args)

    if Dp != D:
        z_df, z_os, mask = z_df[:, :D], z_os[:, :D], mask[:, :D]
    return z_df, z_os, mask


def init_decomposer_params(key, dim, hidden=None, dtype=jnp.float32):
    """Deterministic init mimicking nn.Linear default (uniform +/- 1/sqrt(fan_in))."""
    hidden = hidden or dim * 2
    k1, k2, k3, k4 = jax.random.split(key, 4)
    bound1 = 1.0 / jnp.sqrt(dim)
    bound2 = 1.0 / jnp.sqrt(hidden)
    w1 = jax.random.uniform(k1, (dim, hidden), dtype, -bound1, bound1)
    b1 = jax.random.uniform(k2, (hidden,), dtype, -bound1, bound1)
    w2 = jax.random.uniform(k3, (hidden, dim), dtype, -bound2, bound2)
    b2 = jax.random.uniform(k4, (dim,), dtype, -bound2, bound2)
    return w1, b1, w2, b2


if __name__ == "__main__":
    key = jax.random.PRNGKey(0)
    k_x, k_p = jax.random.split(key)

    batch, dim = 8, 32          # hidden defaults to 2*dim = 64
    z_f = jax.random.normal(k_x, (batch, dim), jnp.float32)
    w1, b1, w2, b2 = init_decomposer_params(k_p, dim)

    z_df, z_os, mask = decomposer_forward(z_f, w1, b1, w2, b2)
    jax.block_until_ready((z_df, z_os, mask))

    # Pure-JAX reference check
    h_ref = jnp.maximum(z_f @ w1 + b1, 0.0)
    mask_ref = jax.nn.sigmoid(h_ref @ w2 + b2)
    assert mask.shape == (batch, dim) and z_df.shape == (batch, dim)
    assert jnp.allclose(mask, mask_ref, atol=1e-5)
    assert jnp.allclose(z_df, mask_ref * z_f, atol=1e-5)
    assert jnp.allclose(z_os, (1.0 - mask_ref) * z_f, atol=1e-5)
    assert jnp.allclose(z_df + z_os, z_f, atol=1e-5)

    print("KERNEL_OK")
</pallas_src>

<mosaic_0001>
module attributes {stable_mosaic.version = 11 : i64} {
  func.func @_decomposer_kernel(%arg0: i32, %arg1: i32, %arg2: memref<8x128xf32, #tpu.memory_space<vmem>>, %arg3: memref<128x64xf32, #tpu.memory_space<vmem>>, %arg4: memref<1x64xf32, #tpu.memory_space<vmem>>, %arg5: memref<64x128xf32, #tpu.memory_space<vmem>>, %arg6: memref<1x128xf32, #tpu.memory_space<vmem>>, %arg7: memref<8x128xf32, #tpu.memory_space<vmem>>, %arg8: memref<8x128xf32, #tpu.memory_space<vmem>>, %arg9: memref<8x128xf32, #tpu.memory_space<vmem>>, %arg10: memref<8x128xf32, #tpu.memory_space<vmem>>) attributes {dimension_semantics = [#tpu.dimension_semantics<parallel>, #tpu.dimension_semantics<arbitrary>], iteration_bounds = array<i64: 1, 1>, scalar_prefetch = 0 : i64, scratch_operands = 1 : i64, tpu.core_type = #tpu.core_type<tc>, window_params = [{transform_indices = @transform_0, window_bounds = array<i64: 8, 128>}, {pipeline_mode = #tpu.pipeline_mode<synchronous>, transform_indices = @transform_1, window_bounds = array<i64: 128, 64>}, {pipeline_mode = #tpu.pipeline_mode<synchronous>, transform_indices = @transform_2, window_bounds = array<i64: 1, 64>}, {pipeline_mode = #tpu.pipeline_mode<synchronous>, transform_indices = @transform_3, window_bounds = array<i64: 64, 128>}, {pipeline_mode = #tpu.pipeline_mode<synchronous>, transform_indices = @transform_4, window_bounds = array<i64: 1, 128>}, {transform_indices = @transform_5, window_bounds = array<i64: 8, 128>}, {transform_indices = @transform_6, window_bounds = array<i64: 8, 128>}, {transform_indices = @transform_7, window_bounds = array<i64: 8, 128>}]} {
    %c0_i32 = arith.constant 0 : i32
    %0 = arith.cmpi eq, %arg1, %c0_i32 : i32
    %1 = arith.extui %0 : i1 to i32
    %c0_i32_0 = arith.constant 0 : i32
    %2 = arith.cmpi ne, %1, %c0_i32_0 : i32
    scf.if %2 {
      %cst_16 = arith.constant 0.000000e+00 : f32
      %19 = vector.broadcast %cst_16 : f32 to vector<8x128xf32>
      %c0_17 = arith.constant 0 : index
      %c0_18 = arith.constant 0 : index
      %20 = vector.load %arg10[%c0_17, %c0_18] : memref<8x128xf32, #tpu.memory_space<vmem>>, vector<8x128xf32>
      tpu.vector_store %arg10[%c0_17, %c0_18], %19 {strides = array<i32>} : memref<8x128xf32, #tpu.memory_space<vmem>>, vector<8x128xf32>,
    } else {
    }
    %c0 = arith.constant 0 : index
    %c0_1 = arith.constant 0 : index
    %3 = vector.load %arg2[%c0, %c0_1] : memref<8x128xf32, #tpu.memory_space<vmem>>, vector<8x128xf32>
    %c0_2 = arith.constant 0 : index
    %c0_3 = arith.constant 0 : index
    %4 = vector.load %arg3[%c0_2, %c0_3] : memref<128x64xf32, #tpu.memory_space<vmem>>, vector<128x64xf32>
    %cst = arith.constant dense<0.000000e+00> : vector<8x64xf32>
    %5 = tpu.matmul %3, %4, %cst {dimension_numbers = #tpu.dot_dimension_numbers<[1], [0], [0], [1], [0, 0, 1, 1], [], []>} : vector<8x128xf32>, vector<128x64xf32>, vector<8x64xf32> -> vector<8x64xf32>
    %c0_4 = arith.constant 0 : index
    %c0_5 = arith.constant 0 : index
    %6 = vector.load %arg4[%c0_4, %c0_5] : memref<1x64xf32, #tpu.memory_space<vmem>>, vector<1x64xf32>
    %7 = vector.broadcast %6 : vector<1x64xf32> to vector<8x64xf32>
    %8 = arith.addf %5, %7 : vector<8x64xf32>
    %cst_6 = arith.constant 0.000000e+00 : f32
    %9 = vector.broadcast %cst_6 : f32 to vector<8x64xf32>
    %10 = arith.maximumf %8, %9 : vector<8x64xf32>
    %c0_7 = arith.constant 0 : index
    %c0_8 = arith.constant 0 : index
    %11 = vector.load %arg10[%c0_7, %c0_8] : memref<8x128xf32, #tpu.memory_space<vmem>>, vector<8x128xf32>
    %c0_9 = arith.constant 0 : index
    %c0_10 = arith.constant 0 : index
    %12 = vector.load %arg5[%c0_9, %c0_10] : memref<64x128xf32, #tpu.memory_space<vmem>>, vector<64x128xf32>
    %cst_11 = arith.constant dense<0.000000e+00> : vector<8x128xf32>
    %13 = tpu.matmul %10, %12, %cst_11 {dimension_numbers = #tpu.dot_dimension_numbers<[1], [0], [0], [1], [0, 0, 1, 1], [], []>} : vector<8x64xf32>, vector<64x128xf32>, vector<8x128xf32> -> vector<8x128xf32>
    %14 = arith.addf %11, %13 : vector<8x128xf32>
    %c0_12 = arith.constant 0 : index
    %c0_13 = arith.constant 0 : index
    %15 = vector.load %arg10[%c0_12, %c0_13] : memref<8x128xf32, #tpu.memory_space<vmem>>, vector<8x128xf32>
    tpu.vector_store %arg10[%c0_12, %c0_13], %14 {strides = array<i32>} : memref<8x128xf32, #tpu.memory_space<vmem>>, vector<8x128xf32>,
    %c0_i32_14 = arith.constant 0 : i32
    %16 = arith.cmpi eq, %arg1, %c0_i32_14 : i32
    %17 = arith.extui %16 : i1 to i32
    %c0_i32_15 = arith.constant 0 : i32
    %18 = arith.cmpi ne, %17, %c0_i32_15 : i32
    scf.if %18 {
      %c0_16 = arith.constant 0 : index
      %c0_17 = arith.constant 0 : index
      %19 = vector.load %arg10[%c0_16, %c0_17] : memref<8x128xf32, #tpu.memory_space<vmem>>, vector<8x128xf32>
      %c0_18 = arith.constant 0 : index
      %c0_19 = arith.constant 0 : index
      %20 = vector.load %arg6[%c0_18, %c0_19] : memref<1x128xf32, #tpu.memory_space<vmem>>, vector<1x128xf32>
      %21 = vector.broadcast %20 : vector<1x128xf32> to vector<8x128xf32>
      %22 = arith.addf %19, %21 : vector<8x128xf32>
      %23 = arith.negf %22 : vector<8x128xf32>
      %24 = math.exp %23 : vector<8x128xf32>
      %cst_20 = arith.constant 1.000000e+00 : f32
      %25 = vector.broadcast %cst_20 : f32 to vector<8x128xf32>
      %26 = arith.addf %25, %24 : vector<8x128xf32>
      %27 = arith.divf %25, %26 : vector<8x128xf32>
      %c0_21 = arith.constant 0 : index
      %c0_22 = arith.constant 0 : index
      %28 = vector.load %arg9[%c0_21, %c0_22] : memref<8x128xf32, #tpu.memory_space<vmem>>, vector<8x128xf32>
      tpu.vector_store %arg9[%c0_21, %c0_22], %27 {strides = array<i32>} : memref<8x128xf32, #tpu.memory_space<vmem>>, vector<8x128xf32>,
      %29 = arith.mulf %27, %3 : vector<8x128xf32>
      %c0_23 = arith.constant 0 : index
      %c0_24 = arith.constant 0 : index
      %30 = vector.load %arg7[%c0_23, %c0_24] : memref<8x128xf32, #tpu.memory_space<vmem>>, vector<8x128xf32>
      tpu.vector_store %arg7[%c0_23, %c0_24], %29 {strides = array<i32>} : memref<8x128xf32, #tpu.memory_space<vmem>>, vector<8x128xf32>,
      %31 = arith.subf %3, %29 : vector<8x128xf32>
      %c0_25 = arith.constant 0 : index
      %c0_26 = arith.constant 0 : index
      %32 = vector.load %arg8[%c0_25, %c0_26] : memref<8x128xf32, #tpu.memory_space<vmem>>, vector<8x128xf32>
      tpu.vector_store %arg8[%c0_25, %c0_26], %31 {strides = array<i32>} : memref<8x128xf32, #tpu.memory_space<vmem>>, vector<8x128xf32>,
    } else {
    }
    return
  }
  func.func @transform_0(%arg0: i32, %arg1: i32) -> (i32, i32) {
    %c0_i32 = arith.constant 0 : i32
    %c0_i32_0 = arith.constant 0 : i32
    return %arg0, %c0_i32 : i32, i32
  }
  func.func @transform_1(%arg0: i32, %arg1: i32) -> (i32, i32) {
    %c0_i32 = arith.constant 0 : i32
    %c0_i32_0 = arith.constant 0 : i32
    return %c0_i32, %arg1 : i32, i32
  }
  func.func @transform_2(%arg0: i32, %arg1: i32) -> (i32, i32) {
    %c0_i32 = arith.constant 0 : i32
    %c0_i32_0 = arith.constant 0 : i32
    return %c0_i32, %arg1 : i32, i32
  }
  func.func @transform_3(%arg0: i32, %arg1: i32) -> (i32, i32) {
    %c0_i32 = arith.constant 0 : i32
    %c0_i32_0 = arith.constant 0 : i32
    return %arg1, %c0_i32 : i32, i32
  }
  func.func @transform_4(%arg0: i32, %arg1: i32) -> (i32, i32) {
    %c0_i32 = arith.constant 0 : i32
    %c0_i32_0 = arith.constant 0 : i32
    %c0_i32_1 = arith.constant 0 : i32
    return %c0_i32, %c0_i32_0 : i32, i32
  }
  func.func @transform_5(%arg0: i32, %arg1: i32) -> (i32, i32) {
    %c0_i32 = arith.constant 0 : i32
    %c0_i32_0 = arith.constant 0 : i32
    return %arg0, %c0_i32 : i32, i32
  }
  func.func @transform_6(%arg0: i32, %arg1: i32) -> (i32, i32) {
    %c0_i32 = arith.constant 0 : i32
    %c0_i32_0 = arith.constant 0 : i32
    return %arg0, %c0_i32 : i32, i32
  }
  func.func @transform_7(%arg0: i32, %arg1: i32) -> (i32, i32) {
    %c0_i32 = arith.constant 0 : i32
    %c0_i32_0 = arith.constant 0 : i32
    return %arg0, %c0_i32 : i32, i32
  }
}

module attributes {stable_mosaic.version = 11 : i64} {
  func.func @_decomposer_kernel(%arg0: i32, %arg1: i32, %arg2: memref<8x128xf32, #tpu.memory_space<vmem>>, %arg3: memref<128x64xf32, #tpu.memory_space<vmem>>, %arg4: memref<1x64xf32, #tpu.memory_space<vmem>>, %arg5: memref<64x128xf32, #tpu.memory_space<vmem>>, %arg6: memref<1x128xf32, #tpu.memory_space<vmem>>, %arg7: memref<8x128xf32, #tpu.memory_space<vmem>>, %arg8: memref<8x128xf32, #tpu.memory_space<vmem>>, %arg9: memref<8x128xf32, #tpu.memory_space<vmem>>, %arg10: memref<8x128xf32, #tpu.memory_space<vmem>>) attributes {dimension_semantics = [#tpu.dimension_semantics<parallel>, #tpu.dimension_semantics<arbitrary>], iteration_bounds = array<i64: 1, 1>, scalar_prefetch = 0 : i64, scratch_operands = 1 : i64, tpu.core_type = #tpu.core_type<tc>, window_params = [{transform_indices = @transform_0, window_bounds = array<i64: 8, 128>}, {transform_indices = @transform_1, window_bounds = array<i64: 128, 64>}, {transform_indices = @transform_2, window_bounds = array<i64: 1, 64>}, {transform_indices = @transform_3, window_bounds = array<i64: 64, 128>}, {pipeline_mode = #tpu.pipeline_mode<synchronous>, transform_indices = @transform_4, window_bounds = array<i64: 1, 128>}, {transform_indices = @transform_5, window_bounds = array<i64: 8, 128>}, {transform_indices = @transform_6, window_bounds = array<i64: 8, 128>}, {transform_indices = @transform_7, window_bounds = array<i64: 8, 128>}]} {
    %c0_i32 = arith.constant 0 : i32
    %0 = arith.cmpi eq, %arg1, %c0_i32 : i32
    %1 = arith.extui %0 : i1 to i32
    %c0_i32_0 = arith.constant 0 : i32
    %2 = arith.cmpi ne, %1, %c0_i32_0 : i32
    scf.if %2 {
      %cst_16 = arith.constant 0.000000e+00 : f32
      %19 = vector.broadcast %cst_16 : f32 to vector<8x128xf32>
      %c0_17 = arith.constant 0 : index
      %c0_18 = arith.constant 0 : index
      %20 = vector.load %arg10[%c0_17, %c0_18] : memref<8x128xf32, #tpu.memory_space<vmem>>, vector<8x128xf32>
      tpu.vector_store %arg10[%c0_17, %c0_18], %19 {strides = array<i32>} : memref<8x128xf32, #tpu.memory_space<vmem>>, vector<8x128xf32>,
    } else {
    }
    %c0 = arith.constant 0 : index
    %c0_1 = arith.constant 0 : index
    %3 = vector.load %arg2[%c0, %c0_1] : memref<8x128xf32, #tpu.memory_space<vmem>>, vector<8x128xf32>
    %c0_2 = arith.constant 0 : index
    %c0_3 = arith.constant 0 : index
    %4 = vector.load %arg3[%c0_2, %c0_3] : memref<128x64xf32, #tpu.memory_space<vmem>>, vector<128x64xf32>
    %cst = arith.constant dense<0.000000e+00> : vector<8x64xf32>
    %5 = tpu.matmul %3, %4, %cst {dimension_numbers = #tpu.dot_dimension_numbers<[1], [0], [0], [1], [0, 0, 1, 1], [], []>} : vector<8x128xf32>, vector<128x64xf32>, vector<8x64xf32> -> vector<8x64xf32>
    %c0_4 = arith.constant 0 : index
    %c0_5 = arith.constant 0 : index
    %6 = vector.load %arg4[%c0_4, %c0_5] : memref<1x64xf32, #tpu.memory_space<vmem>>, vector<1x64xf32>
    %7 = vector.broadcast %6 : vector<1x64xf32> to vector<8x64xf32>
    %8 = arith.addf %5, %7 : vector<8x64xf32>
    %cst_6 = arith.constant 0.000000e+00 : f32
    %9 = vector.broadcast %cst_6 : f32 to vector<8x64xf32>
    %10 = arith.maximumf %8, %9 : vector<8x64xf32>
    %c0_7 = arith.constant 0 : index
    %c0_8 = arith.constant 0 : index
    %11 = vector.load %arg10[%c0_7, %c0_8] : memref<8x128xf32, #tpu.memory_space<vmem>>, vector<8x128xf32>
    %c0_9 = arith.constant 0 : index
    %c0_10 = arith.constant 0 : index
    %12 = vector.load %arg5[%c0_9, %c0_10] : memref<64x128xf32, #tpu.memory_space<vmem>>, vector<64x128xf32>
    %cst_11 = arith.constant dense<0.000000e+00> : vector<8x128xf32>
    %13 = tpu.matmul %10, %12, %cst_11 {dimension_numbers = #tpu.dot_dimension_numbers<[1], [0], [0], [1], [0, 0, 1, 1], [], []>} : vector<8x64xf32>, vector<64x128xf32>, vector<8x128xf32> -> vector<8x128xf32>
    %14 = arith.addf %11, %13 : vector<8x128xf32>
    %c0_12 = arith.constant 0 : index
    %c0_13 = arith.constant 0 : index
    %15 = vector.load %arg10[%c0_12, %c0_13] : memref<8x128xf32, #tpu.memory_space<vmem>>, vector<8x128xf32>
    tpu.vector_store %arg10[%c0_12, %c0_13], %14 {strides = array<i32>} : memref<8x128xf32, #tpu.memory_space<vmem>>, vector<8x128xf32>,
    %c0_i32_14 = arith.constant 0 : i32
    %16 = arith.cmpi eq, %arg1, %c0_i32_14 : i32
    %17 = arith.extui %16 : i1 to i32
    %c0_i32_15 = arith.constant 0 : i32
    %18 = arith.cmpi ne, %17, %c0_i32_15 : i32
    scf.if %18 {
      %c0_16 = arith.constant 0 : index
      %c0_17 = arith.constant 0 : index
      %19 = vector.load %arg10[%c0_16, %c0_17] : memref<8x128xf32, #tpu.memory_space<vmem>>, vector<8x128xf32>
      %c0_18 = arith.constant 0 : index
      %c0_19 = arith.constant 0 : index
      %20 = vector.load %arg6[%c0_18, %c0_19] : memref<1x128xf32, #tpu.memory_space<vmem>>, vector<1x128xf32>
      %21 = vector.broadcast %20 : vector<1x128xf32> to vector<8x128xf32>
      %22 = arith.addf %19, %21 : vector<8x128xf32>
      %23 = arith.negf %22 : vector<8x128xf32>
      %24 = math.exp %23 : vector<8x128xf32>
      %cst_20 = arith.constant 1.000000e+00 : f32
      %25 = vector.broadcast %cst_20 : f32 to vector<8x128xf32>
      %26 = arith.addf %25, %24 : vector<8x128xf32>
      %27 = arith.divf %25, %26 : vector<8x128xf32>
      %c0_21 = arith.constant 0 : index
      %c0_22 = arith.constant 0 : index
      %28 = vector.load %arg9[%c0_21, %c0_22] : memref<8x128xf32, #tpu.memory_space<vmem>>, vector<8x128xf32>
      tpu.vector_store %arg9[%c0_21, %c0_22], %27 {strides = array<i32>} : memref<8x128xf32, #tpu.memory_space<vmem>>, vector<8x128xf32>,
      %29 = arith.mulf %27, %3 : vector<8x128xf32>
      %c0_23 = arith.constant 0 : index
      %c0_24 = arith.constant 0 : index
      %30 = vector.load %arg7[%c0_23, %c0_24] : memref<8x128xf32, #tpu.memory_space<vmem>>, vector<8x128xf32>
      tpu.vector_store %arg7[%c0_23, %c0_24], %29 {strides = array<i32>} : memref<8x128xf32, #tpu.memory_space<vmem>>, vector<8x128xf32>,
      %31 = arith.subf %3, %29 : vector<8x128xf32>
      %c0_25 = arith.constant 0 : index
      %c0_26 = arith.constant 0 : index
      %32 = vector.load %arg8[%c0_25, %c0_26] : memref<8x128xf32, #tpu.memory_space<vmem>>, vector<8x128xf32>
      tpu.vector_store %arg8[%c0_25, %c0_26], %31 {strides = array<i32>} : memref<8x128xf32, #tpu.memory_space<vmem>>, vector<8x128xf32>,
    } else {
    }
    return
  }
  func.func @transform_0(%arg0: i32, %arg1: i32) -> (i32, i32) {
    %c0_i32 = arith.constant 0 : i32
    %c0_i32_0 = arith.constant 0 : i32
    return %arg0, %c0_i32 : i32, i32
  }
  func.func @transform_1(%arg0: i32, %arg1: i32) -> (i32, i32) {
    %c0_i32 = arith.constant 0 : i32
    %c0_i32_0 = arith.constant 0 : i32
    return %c0_i32, %arg1 : i32, i32
  }
  func.func @transform_2(%arg0: i32, %arg1: i32) -> (i32, i32) {
    %c0_i32 = arith.constant 0 : i32
    %c0_i32_0 = arith.constant 0 : i32
    return %c0_i32, %arg1 : i32, i32
  }
  func.func @transform_3(%arg0: i32, %arg1: i32) -> (i32, i32) {
    %c0_i32 = arith.constant 0 : i32
    %c0_i32_0 = arith.constant 0 : i32
    return %arg1, %c0_i32 : i32, i32
  }
  func.func @transform_4(%arg0: i32, %arg1: i32) -> (i32, i32) {
    %c0_i32 = arith.constant 0 : i32
    %c0_i32_0 = arith.constant 0 : i32
    %c0_i32_1 = arith.constant 0 : i32
    return %c0_i32, %c0_i32_0 : i32, i32
  }
  func.func @transform_5(%arg0: i32, %arg1: i32) -> (i32, i32) {
    %c0_i32 = arith.constant 0 : i32
    %c0_i32_0 = arith.constant 0 : i32
    return %arg0, %c0_i32 : i32, i32
  }
  func.func @transform_6(%arg0: i32, %arg1: i32) -> (i32, i32) {
    %c0_i32 = arith.constant 0 : i32
    %c0_i32_0 = arith.constant 0 : i32
    return %arg0, %c0_i32 : i32, i32
  }
  func.func @transform_7(%arg0: i32, %arg1: i32) -> (i32, i32) {
    %c0_i32 = arith.constant 0 : i32
    %c0_i32_0 = arith.constant 0 : i32
    return %arg0, %c0_i32 : i32, i32
  }
}

</mosaic_0001>

<bundles_post_ra>
// kernel: tpu_custom_call.1
= control target key start
LH: loop header
LB: loop body
LE: loop exit
PB: predicated region body
PF: predicated region fallthrough
CT: control target
= control target key end

     0   :  { %13 = vsyncpa [#allocation4], 0  ;;  %v474_v3 = vmov 0.0|0.0   ;;  %vm475_vm0 = vmmov 0   ;;  %v476_v6 = vmov 0.0   ;;  %s651_s0 = inlined_call_operand.vmem [shape: f32[8,128], index: 0, kind: input, shape index: {}]   ;;  %s652_s1 = inlined_call_operand.vmem [shape: f32[128,64], index: 1, kind: input, shape index: {}]   ;;  %s653_s2 = inlined_call_operand.vmem [shape: f32[1,64], index: 2, kind: input, shape index: {}]   ;;  %s654_s3 = inlined_call_operand.vmem [shape: f32[64,128], index: 3, kind: input, shape index: {}]   ;;  %s655_s4 = inlined_call_operand.vmem [shape: f32[1,128], index: 4, kind: input, shape index: {}]   ;;  %s656_s5 = inlined_call_operand.hbm [shape: f32[8,128], index: 5, kind: output, shape index: {0}]   ;;  %s657_s6 = inlined_call_operand.hbm [shape: f32[8,128], index: 6, kind: output, shape index: {1}]   ;;  %s658_s7 = inlined_call_operand.hbm [shape: f32[8,128], index: 7, kind: output, shape index: {2}]  }
   0x1   :  { %v31_v0 = vld [vmem:[%s652_s1] sm:$0xff]  ;;  %v32_v1 = vld [vmem:[%s652_s1 + $0x8] sm:$0xff]  ;;  %v33_v2 = vld [vmem:[%s652_s1 + $0x10] sm:$0xff]  ;;  %358 = vmatprep.subr.bf16.mxu0 %v474_v3  ;;  %336 = vmatprep.mubr.msk.f32.mxu0 %vm475_vm0, %v476_v6 }
   0x2   :  { %v359_v4 = vpack.c.bf16 %v32_v1, %v31_v0  ;;  %v34_v5 = vld [vmem:[%s652_s1 + $0x18] sm:$0xff]  ;;  %382 = vmatprep.subr.bf16.mxu1 %v474_v3  ;;  %355 = vmatprep.mubr.msk.f32.mxu1 %vm475_vm0, %v476_v6  ;;  %v35_v8 = vld [vmem:[%s652_s1 + $0x20] sm:$0xff]  ;;  %v36_v9 = vld [vmem:[%s652_s1 + $0x28] sm:$0xff] }
   0x3   :  { %v362_v7 = vpack.c.bf16 %v34_v5, %v33_v2  ;;  %v126_v10 = vld [vmem:[%s654_s3] sm:$0xff]  ;;  %v127_v11 = vld [vmem:[%s654_s3 + $0x8] sm:$0xff]  ;;  %v128_v12 = vld [vmem:[%s654_s3 + $0x10] sm:$0xff]  ;;  %v365_v14 = vpack.c.bf16 %v36_v9, %v35_v8 }
   0x4   :  { %360 = vmatpush3.bf16.msra.mxu0 %v359_v4  ;;  %v129_v13 = vld [vmem:[%s654_s3 + $0x18] sm:$0xff]  ;;  %v383_v15 = vpack.c.bf16 %v127_v11, %v126_v10  ;;  %v37_v16 = vld [vmem:[%s652_s1 + $0x30] sm:$0xff] }
   0x5   :  { %361 = vmatprep.subr.bf16.mxu0 %v474_v3  ;;  %v38_v17 = vld [vmem:[%s652_s1 + $0x38] sm:$0xff] }
   0x8   :  { %363 = vmatpush3.bf16.msra.mxu0 %v362_v7 }
   0x9   :  { %364 = vmatprep.subr.bf16.mxu0 %v474_v3 }
   0xa   :  { %14 = vsyncpa [#allocation6], 0  ;;  %384 = vmatpush3.bf16.msra.mxu1 %v383_v15  ;;  %v386_v18 = vpack.c.bf16 %v129_v13, %v128_v12  ;;  %v130_v19 = vld [vmem:[%s654_s3 + $0x20] sm:$0xff]  ;;  %v131_v20 = vld [vmem:[%s654_s3 + $0x28] sm:$0xff]  ;;  %v368_v21 = vpack.c.bf16 %v38_v17, %v37_v16  ;;  %vm134_vm1 = vcmask 523264   ;;  %s478_s30 = smov [#allocation5]  }
   0xb   :  { %385 = vmatprep.subr.bf16.mxu1 %v474_v3  ;;  %v39_v22 = vld [vmem:[%s652_s1 + $0x40] sm:$0xff]  ;;  %v40_v23 = vld [vmem:[%s652_s1 + $0x48] sm:$0xff]  ;;  %v389_v24 = vpack.c.bf16 %v131_v20, %v130_v19  ;;  %v41_v26 = vld [vmem:[%s652_s1 + $0x50] sm:$0xff]  ;;  %s249_s8 = sshll.u32 %s478_s30, 4  ;;  %s479_s9 = smov [#allocation7]   ;;  %s601_s8 = int_to_ptr.vmem [resolvable:$true] %s249_s8 }
   0xc   :  { %366 = vmatpush3.bf16.msra.mxu0 %v365_v14  ;;  %v371_v25 = vpack.c.bf16 %v40_v23, %v39_v22  ;;  %v42_v27 = vld [vmem:[%s652_s1 + $0x58] sm:$0xff]  ;;  %v43_v29 = vld [vmem:[%s652_s1 + $0x60] sm:$0xff]  ;;  %v44_v30 = vld [vmem:[%s652_s1 + $0x68] sm:$0xff]  ;;  %s259_s10 = sshll.u32 %s479_s9, 4  ;;  %s603_s10 = int_to_ptr.vmem [resolvable:$true] %s259_s10 }
   0xd   :  { %367 = vmatprep.subr.bf16.mxu0 %v474_v3  ;;  %v374_v28 = vpack.c.bf16 %v42_v27, %v41_v26  ;;  %v377_v31 = vpack.c.bf16 %v44_v30, %v43_v29  ;;  %v45_v32 = vld [vmem:[%s652_s1 + $0x70] sm:$0xff]  ;;  %v46_v33 = vld [vmem:[%s652_s1 + $0x78] sm:$0xff]  ;;  %v30_v35 = vld [vmem:[%s651_s0] sm:$0xff] }
   0xe   :  { %387 = vmatpush3.bf16.msra.mxu1 %v386_v18  ;;  %v380_v34 = vpack.c.bf16 %v46_v33, %v45_v32  ;;  %v132_v36 = vld [vmem:[%s654_s3 + $0x30] sm:$0xff]  ;;  %v133_v37 = vld [vmem:[%s654_s3 + $0x38] sm:$0xff]  ;;  %v274_v39 = vld [vmem:[%s653_s2] ss:$0 sm:$0xff]  ;;  %s477_s3 = smov [#allocation3]  }
   0xf   :  { %388 = vmatprep.subr.bf16.mxu1 %v474_v3  ;;  %v392_v38 = vpack.c.bf16 %v133_v37, %v132_v36  ;;  %v276_v44 = vld [vmem:[%s655_s4] ss:$0 sm:$0xff]  ;;  %s239_s2 = sshll.u32 %s477_s3, 4  ;;  %s240_s2 = int_to_ptr.vmem [resolvable:$true] %s239_s2 }
  0x10   :  { %369 = vmatpush3.bf16.msra.mxu0 %v368_v21  ;;  %s404_s4 = scalar_lea.vmem %s240_s2, 128  ;;  %p409_p1 = scmp.lt.s32.totalorder %s240_s2, %s240_s2 }
  0x11   :  { %370 = vmatprep.subr.bf16.mxu0 %v474_v3  ;;  %p405_p0 = scmp.ne.s32.totalorder %s240_s2, %s404_s4  ;;  %p410_p2 = scmp.lt.s32.totalorder %s404_s4, %s404_s4 }
  0x12   :  { %390 = vmatpush3.bf16.msra.mxu1 %v389_v24 }
  0x13   :  { %391 = vmatprep.subr.bf16.mxu1 %v474_v3  ;;  %p411_p3 = por %p410_p2, %p409_p1 }
  0x14   :  { %372 = vmatpush3.bf16.msra.mxu0 %v371_v25 }
  0x15   :  { %373 = vmatprep.subr.bf16.mxu0 %v474_v3  ;;  %p412_p4 = pnand %p411_p3, %p405_p0 }
  0x16   :  { %393 = vmatpush3.bf16.msra.mxu1 %v392_v38 }
  0x18   :  { %375 = vmatpush3.bf16.msra.mxu0 %v374_v28 }
  0x19   :  { %376 = vmatprep.subr.bf16.mxu0 %v474_v3 }
  0x1c   :  { %378 = vmatpush3.bf16.msra.mxu0 %v377_v31 }
  0x1d   :  { %379 = vmatprep.subr.bf16.mxu0 %v474_v3 }
  0x20   :  { %381 = vmatpush3.bf16.msra.mxu0 %v380_v34 }
  0x23   :  { %337 = vmatmul.mubr.f32.vlgmr.msra.gmra.mrb[0].mxu0 %v30_v35 }
  0xf6   :  { %v120_v40 = vpop.f32.mrb[0].mxu0 }
  0xf7   :  { %v121_v41 = vadd.f32 %v274_v39, %v120_v40  ;;  %v338_v42 = vpop.f32.mrb[1].mxu0 }
  0xf9   :  { %v124_v43 = vmax.f32 %v121_v41, 0.0 }
  0xfb   :  { %356 = vmatmul.mubr.msk.f32.vlgmr.msra.gmra.mrb[0].mxu1 %vm134_vm1, %v124_v43 }
 0x1ce   :  { %v204_v45 = vpop.f32.mrb[0].mxu1 }
 0x1cf   :  { %v221_v46 = vadd.f32 %v276_v44, %v204_v45  ;;  %v357_v47 = vpop.f32.mrb[1].mxu1 }
 0x1d1   :  { %v277_v48 = vmul.f32 -1.442695, %v221_v46 }
 0x1d3   :  { %400 = vpow2.f32 %v277_v48 }
 0x1dd   :  { %v401_v49 = vpop.eup %400 }
 0x1de   :  { %v225_v50 = vadd.f32 1.0, %v401_v49 }
 0x1e0   :  { %402 = vrcp.f32 %v225_v50 }
 0x1ea   :  { %v403_v51 = vpop.eup %402 }
 0x1eb   :  { %228 = vst [vmem:[#allocation7] sm:$0xff] %v403_v51  ;;  %v229_v52 = vmul.f32 %v403_v51, %v30_v35 }
 0x1ed   :  { %v231_v53 = vsub.f32 %v30_v35, %v229_v52  ;;  %230 = vst [vmem:[#allocation3] sm:$0xff] %v229_v52 }
 0x1ee   :  { %415 = shalt.err (!%p412_p4)
}
 0x1ef   :  { %s416_s13 = scalar_lea.hbm %s656_s5, 128 }
 0x1f0   :  { %p417_p5 = scmp.ne.s32.totalorder %s656_s5, %s416_s13  ;;  %p420_p6 = scmp.lt.u32.totalorder %s416_s13, %s656_s5 }
 0x1f2   :  { %p422_p7 = pnand %p420_p6, %p417_p5 }
 0x1f4   :  { %425 = shalt.err (!%p422_p7)
}
 0x1f5   :  { %242 = dma.vmem_to_hbm [thread:$0]  %s240_s2, 128, %s656_s5, [#allocation4]   ;;  %232 = vst [vmem:[#allocation5] sm:$0xff] %v231_v53 }
 0x1f6   :  { %s426_s20 = scalar_lea.vmem %s601_s8, 128  ;;  %p431_p9 = scmp.lt.s32.totalorder %s601_s8, %s601_s8 }
 0x1f7   :  { %p427_p8 = scmp.ne.s32.totalorder %s601_s8, %s426_s20  ;;  %p432_p10 = scmp.lt.s32.totalorder %s426_s20, %s426_s20 }
 0x1f9   :  { %p433_p11 = por %p432_p10, %p431_p9 }
 0x1fb   :  { %p434_p12 = pnand %p433_p11, %p427_p8 }
 0x1fd   :  { %437 = shalt.err (!%p434_p12)
}
 0x1fe   :  { %s438_s23 = scalar_lea.hbm %s657_s6, 128 }
 0x1ff   :  { %p439_p13 = scmp.ne.s32.totalorder %s657_s6, %s438_s23  ;;  %p442_p0 = scmp.lt.u32.totalorder %s438_s23, %s657_s6 }
 0x201   :  { %p444_p1 = pnand %p442_p0, %p439_p13 }
 0x203   :  { %447 = shalt.err (!%p444_p1)
}
 0x204   :  { %252 = dma.vmem_to_hbm [thread:$0]  %s601_s8, 128, %s657_s6, [#allocation6]  }
 0x205   :  { %s448_s28 = scalar_lea.vmem %s603_s10, 128  ;;  %p453_p3 = scmp.lt.s32.totalorder %s603_s10, %s603_s10 }
 0x206   :  { %p449_p2 = scmp.ne.s32.totalorder %s603_s10, %s448_s28  ;;  %p454_p4 = scmp.lt.s32.totalorder %s448_s28, %s448_s28 }
 0x208   :  { %p455_p5 = por %p454_p4, %p453_p3 }
 0x20a   :  { %p456_p6 = pnand %p455_p5, %p449_p2 }
 0x20c   :  { %459 = shalt.err (!%p456_p6)
}
 0x20d   :  { %s460_s3 = scalar_lea.hbm %s658_s7, 128 }
 0x20e   :  { %p461_p7 = scmp.ne.s32.totalorder %s658_s7, %s460_s3  ;;  %p464_p8 = scmp.lt.u32.totalorder %s460_s3, %s658_s7 }
 0x210   :  { %p466_p9 = pnand %p464_p8, %p461_p7 }
 0x212   :  { %469 = shalt.err (!%p466_p9)
}
 0x213   :  { %262 = dma.vmem_to_hbm [thread:$0]  %s603_s10, 128, %s658_s7, [#allocation6]  }
 0x214   :  { %470 = dma.done.wait [#allocation4], 128  }
 0x215   :  { %471 = vsyncadd [#allocation4], 4294967168 }
 0x216   :  { %472 = dma.done.wait [#allocation6], 256  }
 0x217   :  { %473 = vsyncadd [#allocation6], 4294967040 }
 0x218   :  { %272 = vsyncpa [#allocation4], 1 }
 0x219   :  { %273 = vsyncpa [#allocation6], 1 }

// kernel: tpu_custom_call.1
= control target key start
LH: loop header
LB: loop body
LE: loop exit
PB: predicated region body
PF: predicated region fallthrough
CT: control target
= control target key end

     0   :  { %13 = vsyncpa [#allocation4], 0  ;;  %v474_v3 = vmov 0.0|0.0   ;;  %vm475_vm0 = vmmov 0   ;;  %v476_v6 = vmov 0.0   ;;  %s651_s0 = inlined_call_operand.vmem [shape: f32[8,128], index: 0, kind: input, shape index: {}]   ;;  %s652_s1 = inlined_call_operand.vmem [shape: f32[128,64], index: 1, kind: input, shape index: {}]   ;;  %s653_s2 = inlined_call_operand.vmem [shape: f32[1,64], index: 2, kind: input, shape index: {}]   ;;  %s654_s3 = inlined_call_operand.vmem [shape: f32[64,128], index: 3, kind: input, shape index: {}]   ;;  %s655_s4 = inlined_call_operand.vmem [shape: f32[1,128], index: 4, kind: input, shape index: {}]   ;;  %s656_s5 = inlined_call_operand.hbm [shape: f32[8,128], index: 5, kind: output, shape index: {0}]   ;;  %s657_s6 = inlined_call_operand.hbm [shape: f32[8,128], index: 6, kind: output, shape index: {1}]   ;;  %s658_s7 = inlined_call_operand.hbm [shape: f32[8,128], index: 7, kind: output, shape index: {2}]  }
   0x1   :  { %v31_v0 = vld [vmem:[%s652_s1] sm:$0xff]  ;;  %v32_v1 = vld [vmem:[%s652_s1 + $0x8] sm:$0xff]  ;;  %v33_v2 = vld [vmem:[%s652_s1 + $0x10] sm:$0xff]  ;;  %358 = vmatprep.subr.bf16.mxu0 %v474_v3  ;;  %336 = vmatprep.mubr.msk.f32.mxu0 %vm475_vm0, %v476_v6 }
   0x2   :  { %v359_v4 = vpack.c.bf16 %v32_v1, %v31_v0  ;;  %v34_v5 = vld [vmem:[%s652_s1 + $0x18] sm:$0xff]  ;;  %382 = vmatprep.subr.bf16.mxu1 %v474_v3  ;;  %355 = vmatprep.mubr.msk.f32.mxu1 %vm475_vm0, %v476_v6  ;;  %v35_v8 = vld [vmem:[%s652_s1 + $0x20] sm:$0xff]  ;;  %v36_v9 = vld [vmem:[%s652_s1 + $0x28] sm:$0xff] }
   0x3   :  { %v362_v7 = vpack.c.bf16 %v34_v5, %v33_v2  ;;  %v126_v10 = vld [vmem:[%s654_s3] sm:$0xff]  ;;  %v127_v11 = vld [vmem:[%s654_s3 + $0x8] sm:$0xff]  ;;  %v128_v12 = vld [vmem:[%s654_s3 + $0x10] sm:$0xff]  ;;  %v365_v14 = vpack.c.bf16 %v36_v9, %v35_v8 }
   0x4   :  { %360 = vmatpush3.bf16.msra.mxu0 %v359_v4  ;;  %v129_v13 = vld [vmem:[%s654_s3 + $0x18] sm:$0xff]  ;;  %v383_v15 = vpack.c.bf16 %v127_v11, %v126_v10  ;;  %v37_v16 = vld [vmem:[%s652_s1 + $0x30] sm:$0xff] }
   0x5   :  { %361 = vmatprep.subr.bf16.mxu0 %v474_v3  ;;  %v38_v17 = vld [vmem:[%s652_s1 + $0x38] sm:$0xff] }
   0x8   :  { %363 = vmatpush3.bf16.msra.mxu0 %v362_v7 }
   0x9   :  { %364 = vmatprep.subr.bf16.mxu0 %v474_v3 }
   0xa   :  { %14 = vsyncpa [#allocation6], 0  ;;  %384 = vmatpush3.bf16.msra.mxu1 %v383_v15  ;;  %v386_v18 = vpack.c.bf16 %v129_v13, %v128_v12  ;;  %v130_v19 = vld [vmem:[%s654_s3 + $0x20] sm:$0xff]  ;;  %v131_v20 = vld [vmem:[%s654_s3 + $0x28] sm:$0xff]  ;;  %v368_v21 = vpack.c.bf16 %v38_v17, %v37_v16  ;;  %vm134_vm1 = vcmask 523264   ;;  %s478_s30 = smov [#allocation5]  }
   0xb   :  { %385 = vmatprep.subr.bf16.mxu1 %v474_v3  ;;  %v39_v22 = vld [vmem:[%s652_s1 + $0x40] sm:$0xff]  ;;  %v40_v23 = vld [vmem:[%s652_s1 + $0x48] sm:$0xff]  ;;  %v389_v24 = vpack.c.bf16 %v131_v20, %v130_v19  ;;  %v41_v26 = vld [vmem:[%s652_s1 + $0x50] sm:$0xff]  ;;  %s249_s8 = sshll.u32 %s478_s30, 4  ;;  %s479_s9 = smov [#allocation7]   ;;  %s601_s8 = int_to_ptr.vmem [resolvable:$true] %s249_s8 }
   0xc   :  { %366 = vmatpush3.bf16.msra.mxu0 %v365_v14  ;;  %v371_v25 = vpack.c.bf16 %v40_v23, %v39_v22  ;;  %v42_v27 = vld [vmem:[%s652_s1 + $0x58] sm:$0xff]  ;;  %v43_v29 = vld [vmem:[%s652_s1 + $0x60] sm:$0xff]  ;;  %v44_v30 = vld [vmem:[%s652_s1 + $0x68] sm:$0xff]  ;;  %s259_s10 = sshll.u32 %s479_s9, 4  ;;  %s603_s10 = int_to_ptr.vmem [resolvable:$true] %s259_s10 }
   0xd   :  { %367 = vmatprep.subr.bf16.mxu0 %v474_v3  ;;  %v374_v28 = vpack.c.bf16 %v42_v27, %v41_v26  ;;  %v377_v31 = vpack.c.bf16 %v44_v30, %v43_v29  ;;  %v45_v32 = vld [vmem:[%s652_s1 + $0x70] sm:$0xff]  ;;  %v46_v33 = vld [vmem:[%s652_s1 + $0x78] sm:$0xff]  ;;  %v30_v35 = vld [vmem:[%s651_s0] sm:$0xff] }
   0xe   :  { %387 = vmatpush3.bf16.msra.mxu1 %v386_v18  ;;  %v380_v34 = vpack.c.bf16 %v46_v33, %v45_v32  ;;  %v132_v36 = vld [vmem:[%s654_s3 + $0x30] sm:$0xff]  ;;  %v133_v37 = vld [vmem:[%s654_s3 + $0x38] sm:$0xff]  ;;  %v274_v39 = vld [vmem:[%s653_s2] ss:$0 sm:$0xff]  ;;  %s477_s3 = smov [#allocation3]  }
   0xf   :  { %388 = vmatprep.subr.bf16.mxu1 %v474_v3  ;;  %v392_v38 = vpack.c.bf16 %v133_v37, %v132_v36  ;;  %v276_v44 = vld [vmem:[%s655_s4] ss:$0 sm:$0xff]  ;;  %s239_s2 = sshll.u32 %s477_s3, 4  ;;  %s240_s2 = int_to_ptr.vmem [resolvable:$true] %s239_s2 }
  0x10   :  { %369 = vmatpush3.bf16.msra.mxu0 %v368_v21  ;;  %s404_s4 = scalar_lea.vmem %s240_s2, 128  ;;  %p409_p1 = scmp.lt.s32.totalorder %s240_s2, %s240_s2 }
  0x11   :  { %370 = vmatprep.subr.bf16.mxu0 %v474_v3  ;;  %p405_p0 = scmp.ne.s32.totalorder %s240_s2, %s404_s4  ;;  %p410_p2 = scmp.lt.s32.totalorder %s404_s4, %s404_s4 }
  0x12   :  { %390 = vmatpush3.bf16.msra.mxu1 %v389_v24 }
  0x13   :  { %391 = vmatprep.subr.bf16.mxu1 %v474_v3  ;;  %p411_p3 = por %p410_p2, %p409_p1 }
  0x14   :  { %372 = vmatpush3.bf16.msra.mxu0 %v371_v25 }
  0x15   :  { %373 = vmatprep.subr.bf16.mxu0 %v474_v3  ;;  %p412_p4 = pnand %p411_p3, %p405_p0 }
  0x16   :  { %393 = vmatpush3.bf16.msra.mxu1 %v392_v38 }
  0x18   :  { %375 = vmatpush3.bf16.msra.mxu0 %v374_v28 }
  0x19   :  { %376 = vmatprep.subr.bf16.mxu0 %v474_v3 }
  0x1c   :  { %378 = vmatpush3.bf16.msra.mxu0 %v377_v31 }
  0x1d   :  { %379 = vmatprep.subr.bf16.mxu0 %v474_v3 }
  0x20   :  { %381 = vmatpush3.bf16.msra.mxu0 %v380_v34 }
  0x23   :  { %337 = vmatmul.mubr.f32.vlgmr.msra.gmra.mrb[0].mxu0 %v30_v35 }
  0xf6   :  { %v120_v40 = vpop.f32.mrb[0].mxu0 }
  0xf7   :  { %v121_v41 = vadd.f32 %v274_v39, %v120_v40  ;;  %v338_v42 = vpop.f32.mrb[1].mxu0 }
  0xf9   :  { %v124_v43 = vmax.f32 %v121_v41, 0.0 }
  0xfb   :  { %356 = vmatmul.mubr.msk.f32.vlgmr.msra.gmra.mrb[0].mxu1 %vm134_vm1, %v124_v43 }
 0x1ce   :  { %v204_v45 = vpop.f32.mrb[0].mxu1 }
 0x1cf   :  { %v221_v46 = vadd.f32 %v276_v44, %v204_v45  ;;  %v357_v47 = vpop.f32.mrb[1].mxu1 }
 0x1d1   :  { %v277_v48 = vmul.f32 -1.442695, %v221_v46 }
 0x1d3   :  { %400 = vpow2.f32 %v277_v48 }
 0x1dd   :  { %v401_v49 = vpop.eup %400 }
 0x1de   :  { %v225_v50 = vadd.f32 1.0, %v401_v49 }
 0x1e0   :  { %402 = vrcp.f32 %v225_v50 }
 0x1ea   :  { %v403_v51 = vpop.eup %402 }
 0x1eb   :  { %228 = vst [vmem:[#allocation7] sm:$0xff] %v403_v51  ;;  %v229_v52 = vmul.f32 %v403_v51, %v30_v35 }
 0x1ed   :  { %v231_v53 = vsub.f32 %v30_v35, %v229_v52  ;;  %230 = vst [vmem:[#allocation3] sm:$0xff] %v229_v52 }
 0x1ee   :  { %415 = shalt.err (!%p412_p4)
}
 0x1ef   :  { %s416_s13 = scalar_lea.hbm %s656_s5, 128 }
 0x1f0   :  { %p417_p5 = scmp.ne.s32.totalorder %s656_s5, %s416_s13  ;;  %p420_p6 = scmp.lt.u32.totalorder %s416_s13, %s656_s5 }
 0x1f2   :  { %p422_p7 = pnand %p420_p6, %p417_p5 }
 0x1f4   :  { %425 = shalt.err (!%p422_p7)
}
 0x1f5   :  { %242 = dma.vmem_to_hbm [thread:$0]  %s240_s2, 128, %s656_s5, [#allocation4]   ;;  %232 = vst [vmem:[#allocation5] sm:$0xff] %v231_v53 }
 0x1f6   :  { %s426_s20 = scalar_lea.vmem %s601_s8, 128  ;;  %p431_p9 = scmp.lt.s32.totalorder %s601_s8, %s601_s8 }
 0x1f7   :  { %p427_p8 = scmp.ne.s32.totalorder %s601_s8, %s426_s20  ;;  %p432_p10 = scmp.lt.s32.totalorder %s426_s20, %s426_s20 }
 0x1f9   :  { %p433_p11 = por %p432_p10, %p431_p9 }
 0x1fb   :  { %p434_p12 = pnand %p433_p11, %p427_p8 }
 0x1fd   :  { %437 = shalt.err (!%p434_p12)
}
 0x1fe   :  { %s438_s23 = scalar_lea.hbm %s657_s6, 128 }
 0x1ff   :  { %p439_p13 = scmp.ne.s32.totalorder %s657_s6, %s438_s23  ;;  %p442_p0 = scmp.lt.u32.totalorder %s438_s23, %s657_s6 }
 0x201   :  { %p444_p1 = pnand %p442_p0, %p439_p13 }
 0x203   :  { %447 = shalt.err (!%p444_p1)
}
 0x204   :  { %252 = dma.vmem_to_hbm [thread:$0]  %s601_s8, 128, %s657_s6, [#allocation6]  }
 0x205   :  { %s448_s28 = scalar_lea.vmem %s603_s10, 128  ;;  %p453_p3 = scmp.lt.s32.totalorder %s603_s10, %s603_s10 }
 0x206   :  { %p449_p2 = scmp.ne.s32.totalorder %s603_s10, %s448_s28  ;;  %p454_p4 = scmp.lt.s32.totalorder %s448_s28, %s448_s28 }
 0x208   :  { %p455_p5 = por %p454_p4, %p453_p3 }
 0x20a   :  { %p456_p6 = pnand %p455_p5, %p449_p2 }
 0x20c   :  { %459 = shalt.err (!%p456_p6)
}
 0x20d   :  { %s460_s3 = scalar_lea.hbm %s658_s7, 128 }
 0x20e   :  { %p461_p7 = scmp.ne.s32.totalorder %s658_s7, %s460_s3  ;;  %p464_p8 = scmp.lt.u32.totalorder %s460_s3, %s658_s7 }
 0x210   :  { %p466_p9 = pnand %p464_p8, %p461_p7 }
 0x212   :  { %469 = shalt.err (!%p466_p9)
}
 0x213   :  { %262 = dma.vmem_to_hbm [thread:$0]  %s603_s10, 128, %s658_s7, [#allocation6]  }
 0x214   :  { %470 = dma.done.wait [#allocation4], 128  }
 0x215   :  { %471 = vsyncadd [#allocation4], 4294967168 }
 0x216   :  { %472 = dma.done.wait [#allocation6], 256  }
 0x217   :  { %473 = vsyncadd [#allocation6], 4294967040 }
 0x218   :  { %272 = vsyncpa [#allocation4], 1 }
 0x219   :  { %273 = vsyncpa [#allocation6], 1 }

</bundles_post_ra>
